<compile_context>
chip_gen: v7x
topology: tpu7x:2x2x1
jax: 0.10.0
libtpu: 0.0.40
codegen_flags: <defaults>
</compile_context>

<pallas_src>
import functools

import jax
import jax.numpy as jnp
from jax.experimental import pallas as pl
from jax.experimental.pallas import tpu as pltpu


def _round_up(a: int, b: int) -> int:
    return (a + b - 1) // b * b


def _mlp_block_kernel(x_ref, wup_ref, bup_ref, wd_ref, bd_ref, o_ref, *, expanded):
    # Fused up-projection: (tm, d) @ (d, 2E) -> (tm, 2E), f32 accumulation on the MXU.
    up = jnp.dot(x_ref[...], wup_ref[...], preferred_element_type=jnp.float32)
    up = up + bup_ref[...].astype(jnp.float32)

    up0 = up[:, :expanded]          # gate pre-activation
    up1 = up[:, expanded:]          # value

    # GELU with tanh approximation (matches F.gelu(..., approximate='tanh')).
    c = jnp.float32(0.7978845608028654)  # sqrt(2/pi)
    gate = 0.5 * up0 * (1.0 + jnp.tanh(c * (up0 + 0.044715 * (up0 * up0 * up0))))
    act = gate * up1                # only two (tm, E) f32 intermediates live here

    # Down-projection: (tm, E) @ (E, d_pad) -> (tm, d_pad), lane-dense store.
    out = jnp.dot(act.astype(wd_ref.dtype), wd_ref[...],
                  preferred_element_type=jnp.float32)
    out = out + bd_ref[...].astype(jnp.float32)
    o_ref[...] = out.astype(o_ref.dtype)


def prepare_mlp_params(w_up, b_up, w_down, b_down, *, d_pad):
    """One-time (outside jit) param prep: fuse w0||w1, transpose W_down, pad to lane-dense."""
    d, E = w_up.shape[1], w_up.shape[2]
    w_cat = jnp.concatenate([w_up[0], w_up[1]], axis=-1)                  # (d, 2E)
    b_cat = jnp.concatenate(
        [b_up[0].reshape(1, E), b_up[1].reshape(1, E)], axis=-1)          # (1, 2E)
    wd_t = w_down.T                                                       # (E, d)
    bd = b_down.reshape(1, d)                                             # (1, d)
    if d_pad > d:
        wd_t = jnp.pad(wd_t, ((0, 0), (0, d_pad - d)))                    # (E, d_pad)
        bd = jnp.pad(bd, ((0, 0), (0, d_pad - d)))                        # (1, d_pad)
    return w_cat, b_cat, wd_t, bd


@functools.partial(jax.jit, static_argnames=("tm",))
def mlp_block_apply(x, w_cat, b_cat, wd_t, bd, *, tm=256):
    """x: (B, T, d). w_cat: (d, 2E). b_cat: (1, 2E). wd_t: (E, d_pad). bd: (1, d_pad)."""
    B, T, d = x.shape
    two_e = w_cat.shape[-1]
    E = two_e // 2
    d_pad = wd_t.shape[-1]
    M = B * T
    x2 = x.reshape(M, d)

    # Row tile: as large as requested, but keep >= 2 grid steps when possible
    # (v7x has 2 TensorCores sharded along the parallel M axis).
    tm_eff = min(tm, _round_up(M, 8))
    if pl.cdiv(M, tm_eff) < 2 and tm_eff > 8:
        tm_eff = _round_up(max(8, _round_up(M, 8) // 2), 8)
    M_pad = _round_up(M, tm_eff)
    if M_pad > M:
        x2 = jnp.pad(x2, ((0, M_pad - M), (0, 0)))
    grid = (M_pad // tm_eff,)

    # Explicit VMEM budget: double-buffered x/out tiles + resident weights + intermediates.
    xb = x.dtype.itemsize
    wb = w_cat.dtype.itemsize
    est = (2 * tm_eff * (d + d_pad) * xb
           + 2 * (d * two_e + two_e + E * d_pad + d_pad) * wb
           + 2 * tm_eff * (two_e + d_pad) * 4)
    vmem_limit = int(min(max(2 * est, 32 * 1024 * 1024), 100 * 1024 * 1024))

    out = pl.pallas_call(
        functools.partial(_mlp_block_kernel, expanded=E),
        out_shape=jax.ShapeDtypeStruct((M_pad, d_pad), x.dtype),
        grid_spec=pltpu.PrefetchScalarGridSpec(
            num_scalar_prefetch=0,
            grid=grid,
            in_specs=[
                pl.BlockSpec((tm_eff, d), lambda i: (i, 0)),   # x rows (streamed)
                pl.BlockSpec((d, two_e), lambda i: (0, 0)),    # fused w0||w1 (resident)
                pl.BlockSpec((1, two_e), lambda i: (0, 0)),    # fused bias b0||b1
                pl.BlockSpec((E, d_pad), lambda i: (0, 0)),    # W_down^T (padded, resident)
                pl.BlockSpec((1, d_pad), lambda i: (0, 0)),    # b_down (padded)
            ],
            out_specs=pl.BlockSpec((tm_eff, d_pad), lambda i: (i, 0)),
        ),
        compiler_params=pltpu.CompilerParams(
            dimension_semantics=("parallel",),
            vmem_limit_bytes=vmem_limit,
        ),
    )(x2, w_cat, b_cat, wd_t, bd)

    return out[:M, :d].reshape(B, T, d)


def mlp_block(x, w_up, b_up, w_down, b_down, *, tm=256):
    """Convenience wrapper taking the raw PyTorch-layout parameters."""
    d = x.shape[-1]
    d_pad = _round_up(d, 128)  # lane-dense output (unmasked vst) when d < 128
    params = prepare_mlp_params(w_up, b_up, w_down, b_down, d_pad=d_pad)
    return mlp_block_apply(x, *params, tm=tm)


def _reference(x, w_up, b_up, w_down, b_down):
    """Plain-JAX reference mirroring the PyTorch forward exactly."""
    out = jnp.einsum("...td,cdD->c...tD", x, w_up) + b_up
    gate = jax.nn.gelu(out[0], approximate=True)
    act = gate * out[1]
    return act @ w_down.T + b_down


if __name__ == "__main__":
    # Small shapes consistent with the module: batch=2, seq=8, width=32, expanded=128.
    B, T, width, expanded = 2, 8, 32, 128

    key = jax.random.PRNGKey(0)
    kx, kw, kb, kwd, kbd = jax.random.split(key, 5)

    x = jax.random.normal(kx, (B, T, width), dtype=jnp.float32)
    # Deterministic synthetic parameters (shapes from MLPBlock.__init__).
    w_up = jax.random.normal(kw, (2, width, expanded), dtype=jnp.float32) * 0.02
    b_up = jax.random.normal(kb, (2, 1, 1, expanded), dtype=jnp.float32) * 0.01
    w_down = jax.random.normal(kwd, (width, expanded), dtype=jnp.float32) * 0.02
    b_down = jax.random.normal(kbd, (width,), dtype=jnp.float32) * 0.01

    y = mlp_block(x, w_up, b_up, w_down, b_down)
    y = jax.block_until_ready(y)

    y_ref = _reference(x, w_up, b_up, w_down, b_down)
    assert y.shape == (B, T, width)
    assert jnp.allclose(y, y_ref, atol=2e-5, rtol=2e-5), "mismatch vs reference"

    print("KERNEL_OK")
</pallas_src>

<mosaic_0001>
module attributes {stable_mosaic.version = 11 : i64} {
  func.func @_mlp_block_kernel(%arg0: i32, %arg1: memref<8x32xf32, #tpu.memory_space<vmem>>, %arg2: memref<32x256xf32, #tpu.memory_space<vmem>>, %arg3: memref<1x256xf32, #tpu.memory_space<vmem>>, %arg4: memref<128x128xf32, #tpu.memory_space<vmem>>, %arg5: memref<1x128xf32, #tpu.memory_space<vmem>>, %arg6: memref<8x128xf32, #tpu.memory_space<vmem>>) attributes {dimension_semantics = [#tpu.dimension_semantics<parallel>], iteration_bounds = array<i64: 2>, scalar_prefetch = 0 : i64, scratch_operands = 0 : i64, tpu.core_type = #tpu.core_type<tc>, window_params = [{transform_indices = @transform_0, window_bounds = array<i64: 8, 32>}, {pipeline_mode = #tpu.pipeline_mode<synchronous>, transform_indices = @transform_1, window_bounds = array<i64: 32, 256>}, {pipeline_mode = #tpu.pipeline_mode<synchronous>, transform_indices = @transform_2, window_bounds = array<i64: 1, 256>}, {pipeline_mode = #tpu.pipeline_mode<synchronous>, transform_indices = @transform_3, window_bounds = array<i64: 128, 128>}, {pipeline_mode = #tpu.pipeline_mode<synchronous>, transform_indices = @transform_4, window_bounds = array<i64: 1, 128>}, {transform_indices = @transform_5, window_bounds = array<i64: 8, 128>}]} {
    %c0 = arith.constant 0 : index
    %c0_0 = arith.constant 0 : index
    %0 = vector.load %arg1[%c0, %c0_0] : memref<8x32xf32, #tpu.memory_space<vmem>>, vector<8x32xf32>
    %c0_1 = arith.constant 0 : index
    %c0_2 = arith.constant 0 : index
    %1 = vector.load %arg2[%c0_1, %c0_2] : memref<32x256xf32, #tpu.memory_space<vmem>>, vector<32x256xf32>
    %cst = arith.constant dense<0.000000e+00> : vector<8x256xf32>
    %2 = tpu.matmul %0, %1, %cst {dimension_numbers = #tpu.dot_dimension_numbers<[1], [0], [0], [1], [0, 0, 1, 1], [], []>} : vector<8x32xf32>, vector<32x256xf32>, vector<8x256xf32> -> vector<8x256xf32>
    %c0_3 = arith.constant 0 : index
    %c0_4 = arith.constant 0 : index
    %3 = vector.load %arg3[%c0_3, %c0_4] : memref<1x256xf32, #tpu.memory_space<vmem>>, vector<1x256xf32>
    %4 = vector.broadcast %3 : vector<1x256xf32> to vector<8x256xf32>
    %5 = arith.addf %2, %4 : vector<8x256xf32>
    %6 = vector.extract_strided_slice %5 {offsets = [0, 0], sizes = [8, 128], strides = [1, 1]} : vector<8x256xf32> to vector<8x128xf32>
    %7 = vector.extract_strided_slice %5 {offsets = [0, 128], sizes = [8, 128], strides = [1, 1]} : vector<8x256xf32> to vector<8x128xf32>
    %cst_5 = arith.constant 5.000000e-01 : f32
    %8 = vector.broadcast %cst_5 : f32 to vector<8x128xf32>
    %9 = arith.mulf %8, %6 : vector<8x128xf32>
    %10 = arith.mulf %6, %6 : vector<8x128xf32>
    %11 = arith.mulf %10, %6 : vector<8x128xf32>
    %cst_6 = arith.constant 4.471500e-02 : f32
    %12 = vector.broadcast %cst_6 : f32 to vector<8x128xf32>
    %13 = arith.mulf %12, %11 : vector<8x128xf32>
    %14 = arith.addf %6, %13 : vector<8x128xf32>
    %cst_7 = arith.constant 0.797884583 : f32
    %15 = vector.broadcast %cst_7 : f32 to vector<8x128xf32>
    %16 = arith.mulf %15, %14 : vector<8x128xf32>
    %17 = math.tanh %16 : vector<8x128xf32>
    %cst_8 = arith.constant 1.000000e+00 : f32
    %18 = vector.broadcast %cst_8 : f32 to vector<8x128xf32>
    %19 = arith.addf %18, %17 : vector<8x128xf32>
    %20 = arith.mulf %9, %19 : vector<8x128xf32>
    %21 = arith.mulf %20, %7 : vector<8x128xf32>
    %c0_9 = arith.constant 0 : index
    %c0_10 = arith.constant 0 : index
    %22 = vector.load %arg4[%c0_9, %c0_10] : memref<128x128xf32, #tpu.memory_space<vmem>>, vector<128x128xf32>
    %cst_11 = arith.constant dense<0.000000e+00> : vector<8x128xf32>
    %23 = tpu.matmul %21, %22, %cst_11 {dimension_numbers = #tpu.dot_dimension_numbers<[1], [0], [0], [1], [0, 0, 1, 1], [], []>} : vector<8x128xf32>, vector<128x128xf32>, vector<8x128xf32> -> vector<8x128xf32>
    %c0_12 = arith.constant 0 : index
    %c0_13 = arith.constant 0 : index
    %24 = vector.load %arg5[%c0_12, %c0_13] : memref<1x128xf32, #tpu.memory_space<vmem>>, vector<1x128xf32>
    %25 = vector.broadcast %24 : vector<1x128xf32> to vector<8x128xf32>
    %26 = arith.addf %23, %25 : vector<8x128xf32>
    %c0_14 = arith.constant 0 : index
    %c0_15 = arith.constant 0 : index
    %27 = vector.load %arg6[%c0_14, %c0_15] : memref<8x128xf32, #tpu.memory_space<vmem>>, vector<8x128xf32>
    tpu.vector_store %arg6[%c0_14, %c0_15], %26 {strides = array<i32>} : memref<8x128xf32, #tpu.memory_space<vmem>>, vector<8x128xf32>,
    return
  }
  func.func @transform_0(%arg0: i32) -> (i32, i32) {
    %c0_i32 = arith.constant 0 : i32
    %c0_i32_0 = arith.constant 0 : i32
    return %arg0, %c0_i32 : i32, i32
  }
  func.func @transform_1(%arg0: i32) -> (i32, i32) {
    %c0_i32 = arith.constant 0 : i32
    %c0_i32_0 = arith.constant 0 : i32
    %c0_i32_1 = arith.constant 0 : i32
    return %c0_i32, %c0_i32_0 : i32, i32
  }
  func.func @transform_2(%arg0: i32) -> (i32, i32) {
    %c0_i32 = arith.constant 0 : i32
    %c0_i32_0 = arith.constant 0 : i32
    %c0_i32_1 = arith.constant 0 : i32
    return %c0_i32, %c0_i32_0 : i32, i32
  }
  func.func @transform_3(%arg0: i32) -> (i32, i32) {
    %c0_i32 = arith.constant 0 : i32
    %c0_i32_0 = arith.constant 0 : i32
    %c0_i32_1 = arith.constant 0 : i32
    return %c0_i32, %c0_i32_0 : i32, i32
  }
  func.func @transform_4(%arg0: i32) -> (i32, i32) {
    %c0_i32 = arith.constant 0 : i32
    %c0_i32_0 = arith.constant 0 : i32
    %c0_i32_1 = arith.constant 0 : i32
    return %c0_i32, %c0_i32_0 : i32, i32
  }
  func.func @transform_5(%arg0: i32) -> (i32, i32) {
    %c0_i32 = arith.constant 0 : i32
    %c0_i32_0 = arith.constant 0 : i32
    return %arg0, %c0_i32 : i32, i32
  }
}

</mosaic_0001>

<bundles_post_ra>
// kernel: mlp_block_apply.1
= control target key start
LH: loop header
LB: loop body
LE: loop exit
PB: predicated region body
PF: predicated region fallthrough
CT: control target
= control target key end

     0   :  { %10 = vsyncpa [#allocation3], 0  ;;  %s1071_s0 = inlined_call_operand.hbm [shape: f32[16,32], index: 0, kind: input, shape index: {}]   ;;  %s1072_s1 = inlined_call_operand.hbm [shape: f32[32,256], index: 1, kind: input, shape index: {}]   ;;  %s1073_s2 = inlined_call_operand.vmem [shape: f32[1,256], index: 2, kind: input, shape index: {}]   ;;  %s1074_s3 = inlined_call_operand.hbm [shape: f32[128,128], index: 3, kind: input, shape index: {}]   ;;  %s1075_s4 = inlined_call_operand.vmem [shape: f32[1,128], index: 4, kind: input, shape index: {}]   ;;  %s1076_s5 = inlined_call_operand.vmem [shape: f32[16,128], index: 5, kind: output, shape index: {}]  }
   0x1   :  { %12 = vsyncpa [#allocation3 + $0x1], 0 }
   0x2   :  { %13 = vsyncpa [#allocation5], 0  ;;  %s888_s18 = smov 0   ;;  %s890_s19 = smov 0  }
   0x3   :  { %s892_s20 = smov 0   ;;  %s894_s21 = smov 0  }
   0x4 LB: > { %s907_s22 = sadd.s32 4294967295, %s846_s21   ;;  %p39_p0 = scmp.ne.s32.totalorder %s838_s19, %s834_s18  ;;  %s846_s21 = sphi %s894_s21, %s1091_s21   ;;  %s842_s20 = sphi %s892_s20, %s1090_s20   ;;  %s838_s19 = sphi %s890_s19, %s1089_s19   ;;  %s834_s18 = sphi %s888_s18, %s1088_s18  }
   0x5   : > { %p1077_p1 = scmp.eq.s32.totalorder %s907_s22, 0  ;;  %p554_p2 = scmp.ge.s32.totalorder %s846_s21, 1 }
   0x6   : > { %p160_p3 = scmp.lt.s32.totalorder %s846_s21, 3  ;;  %s848_s25 = smov [#allocation4]  }
   0x7   : > { %p915_p4 = por %p1077_p1, %p39_p0  ;;  %s172_s26 = sshll.u32 %s848_s25, 4  ;;  %s173_s26 = int_to_ptr.vmem [resolvable:$true] %s172_s26 }
   0x8   : > { %p919_p5 = pnand %p554_p2, %p160_p3  ;;  %s849_s28 = smov [#allocation6]  }
   0x9   : > { %s1080_s23 = scalar_select %p915_p4, 1, 0 }
   0xa   : > { %s1081_s24 = scalar_select %p919_p5, 1, 0 }
   0xb   : > { %p663_p6 = pneg %p919_p5  ;;  %s188_s29 = sshll.u32 %s849_s28, 4  ;;  %s931_s29 = int_to_ptr.vmem [resolvable:$true] %s188_s29 }
   0xc   : > { %s722_s7 = scalar_lea.hbm %s1072_s1, 1024 }
   0xd   : > { %p927_p7 = pnand %p663_p6, %p1077_p1  ;;  %p723_p8 = scmp.ne.s32.totalorder %s1072_s1, %s722_s7 }
   0xe   : > { %p729_p12 = scmp.lt.u32.totalorder %s722_s7, %s1072_s1 }
   0xf   : > { %p724_p9 = pneg %p927_p7 }
  0x11   : > { %p725_p10 = pnand %p724_p9, %p723_p8 }
  0x13   : > { %p726_p11 = pneg %p725_p10 }
  0x15   : > { %p731_p13 = pnand %p729_p12, %p726_p11 }
  0x17   : > { %734 = shalt.err (!%p731_p13)
}
  0x18   : > { %s735_s12 = scalar_lea.vmem %s173_s26, 1024  ;;  %p743_p6 = scmp.lt.s32.totalorder %s173_s26, %s173_s26 }
  0x19   : > { %p736_p0 = scmp.ne.s32.totalorder %s173_s26, %s735_s12  ;;  %p744_p1 = scmp.lt.s32.totalorder %s735_s12, %s735_s12 }
  0x1b   : > { %p738_p2 = pnand %p736_p0, %p724_p9  ;;  %p745_p4 = por %p744_p1, %p743_p6 }
  0x1d   : > { %p739_p3 = pneg %p738_p2 }
  0x1f   : > { %p746_p5 = pnand %p745_p4, %p739_p3 }
  0x21   : > { %749 = shalt.err (!%p746_p5)
}
  0x22   : > { %s850_s13 = smov 256   ;;  %s851_s14 = smov 16  }
  0x23   : > { %666 = dma.hbm_to_vmem [thread:$0]  (!%p927_p7), %s1072_s1, 1024, %s173_s26, [#allocation5], %s850_s13, %s850_s13, %s851_s14  }
  0x24   : > { %s750_s25 = scalar_lea.hbm %s1074_s3, 2048 }
  0x25   : > { %p751_p8 = scmp.ne.s32.totalorder %s1074_s3, %s750_s25  ;;  %p757_p5 = scmp.lt.u32.totalorder %s750_s25, %s1074_s3 }
  0x27   : > { %p753_p1 = pnand %p751_p8, %p724_p9 }
  0x29   : > { %p754_p4 = pneg %p753_p1 }
  0x2b   : > { %p759_p10 = pnand %p757_p5, %p754_p4 }
  0x2d   : > { %762 = shalt.err (!%p759_p10)
}
  0x2e   : > { %s763_s26 = scalar_lea.vmem %s931_s29, 2048  ;;  %p771_p0 = scmp.lt.s32.totalorder %s931_s29, %s931_s29 }
  0x2f   : > { %p764_p11 = scmp.ne.s32.totalorder %s931_s29, %s763_s26  ;;  %p772_p2 = scmp.lt.s32.totalorder %s763_s26, %s763_s26 }
  0x31   : > { %p766_p12 = pnand %p764_p11, %p724_p9  ;;  %p773_p3 = por %p772_p2, %p771_p0 }
  0x33   : > { %p767_p13 = pneg %p766_p12 }
  0x35   : > { %p774_p6 = pnand %p773_p3, %p767_p13 }
  0x37   : > { %777 = shalt.err (!%p774_p6)
}
  0x38   : > { %s852_s8 = smov 128   ;;  %s853_s9 = smov 8  }
  0x39   : > { %669 = dma.hbm_to_vmem [thread:$0]  (!%p927_p7), %s1074_s3, 2048, %s931_s29, [#allocation5], %s852_s8, %s852_s8, %s853_s9  }
  0x3a   : > { %s981_s12 = sadd.s32 1, %s846_s21   ;;  %s26_s14 = sadd.s32 1, %s842_s20 }
  0x3b   : > { %s23_s13 = ssub.s32 %s846_s21, %s981_s12  ;;  %p33_p8 = scmp.ne.s32.totalorder %s842_s20, %s838_s19 }
  0x3c   : > { %p24_p9 = scmp.eq.s32.totalorder %s23_s13, 0  ;;  %p34_p1 = scmp.eq.s32.totalorder %s846_s21, 0 }
  0x3d   : > { %p676_p5 = scmp.lt.s32.totalorder %s846_s21, 2  ;;  %s205_s16 = sand.u32 1, %s842_s20  }
  0x3e   : > { %s990_s15 = scalar_select %p24_p9, %s842_s20, %s26_s14  }
  0x3f   : > { %p35_p4 = por %p34_p1, %p33_p8  ;;  %s559_s17 = sshll.u32 %s846_s21, 7 }
  0x40   : > { %s558_s18 = sshll.u32 %s205_s16, 3  ;;  %s998_s28 = scalar_lea.hbm %s1071_s0, %s559_s17 }
  0x41   : > { %s209_s29 = scalar_lea.vmem [#allocation2], %s558_s18  ;;  %p1000_p7 = pnand %p676_p5, %p35_p4 }
  0x42   : > { %s216_s30 = sshll.u32 %s209_s29, 4  ;;  %s206_s21 = scalar_lea.sflag [#allocation3], %s205_s16  ;;  %s1004_s30 = int_to_ptr.vmem [resolvable:$true] %s216_s30 }
  0x43   : > { %s778_s7 = scalar_lea.hbm %s998_s28, 128  ;;  %p780_p11 = pneg %p1000_p7 }
  0x44   : > { %p779_p10 = scmp.ne.s32.totalorder %s998_s28, %s778_s7  ;;  %s783_s9 = scalar_lea.hbm %s1071_s0, 256 }
  0x45   : > { %p784_p0 = scmp.lt.u32.totalorder %s998_s28, %s1071_s0  ;;  %p785_p2 = scmp.lt.u32.totalorder %s783_s9, %s778_s7 }
  0x46   : > { %p781_p12 = pnand %p780_p11, %p779_p10  ;;  %p787_p6 = scmp.lt.u32.totalorder %s778_s7, %s998_s28 }
  0x47   : > { %p786_p3 = por %p785_p2, %p784_p0 }
  0x48   : > { %p782_p13 = pneg %p781_p12 }
  0x49   : > { %p788_p9 = por %p787_p6, %p786_p3 }
  0x4b   : > { %p789_p8 = pnand %p788_p9, %p782_p13 }
  0x4d   : > { %792 = shalt.err (!%p789_p8)
}
  0x4e   : > { %s793_s13 = scalar_lea.vmem %s1004_s30, 128  ;;  %s854_s14 = smov [#allocation2]  }
  0x4f   : > { %p794_p1 = scmp.ne.s32.totalorder %s1004_s30, %s793_s13  ;;  %s798_s16 = sshll.u32 %s854_s14, 4  ;;  %s799_s16 = int_to_ptr.vmem [resolvable:$false] %s798_s16 }
  0x50   : > { %s800_s17 = scalar_lea.vmem %s799_s16, 256  ;;  %p801_p10 = scmp.lt.s32.totalorder %s1004_s30, %s799_s16 }
  0x51   : > { %p796_p4 = pnand %p794_p1, %p780_p11  ;;  %p802_p12 = scmp.lt.s32.totalorder %s800_s17, %s793_s13 }
  0x53   : > { %p797_p5 = pneg %p796_p4  ;;  %p803_p0 = por %p802_p12, %p801_p10 }
  0x55   : > { %p804_p2 = pnand %p803_p0, %p797_p5 }
  0x57   : > { %807 = shalt.err (!%p804_p2)
}
  0x58   : > { %673 = dma.hbm_to_vmem [thread:$0]  (!%p1000_p7), %s998_s28, 128, %s1004_s30, %s206_s21  }
  0x59   : > { %p1084_p13 = scmp.ne.s32.totalorder %s1081_s24, 0 }
  0x5a   : > { %s227_s18 = sand.u32 (!%p1084_p13), 1, %s838_s19   ;;  %p1085_p11 = scmp.ne.s32.totalorder (!%p1084_p13), %s1080_s23, 0 }
  0x5b   : > { %225 = sbr.rel (%p1084_p13) target bundleno = 569 (0x239), region = 40  ;;  %s1034_s27 = sshll.u32 (!%p1084_p13), %s227_s18, 3 }
  0x5c   : > { %s228_s25 = scalar_lea.sflag (!%p1084_p13), [#allocation3], %s227_s18  ;;  %s231_s29 = scalar_lea.vmem (!%p1084_p13), [#allocation2], %s1034_s27 }
  0x62   : > { %825 = dma.done.wait (%p1085_p11), %s228_s25, 128  }
  0x63   : > { %827 = vsyncadd (%p1085_p11), %s228_s25, 4294967168  ;;  %p1086_p3 = scmp.eq.s32.totalorder %s907_s22, 0 }
  0x65   : > { %829 = dma.done.wait (%p1086_p3), [#allocation5], 3072   ;;  %p1087_p7 = pmov %p1086_p3 }
  0x66   : > { %v855_v0 = vmov 0.0   ;;  %v856_v1 = vmov 0.0|0.0   ;;  %v271_v2 = vld [vmem:[#allocation4 + $0x8] sm:$0xff]  ;;  %v273_v3 = vld [vmem:[#allocation4 + $0x18] sm:$0xff]  ;;  %v270_v4 = vld [vmem:[#allocation4] sm:$0xff]  ;;  %vm290_vm0 = vcmask 261120   ;;  %v280_v39 = vlaneseq }
  0x67   : > { %831 = vsyncadd (%p1087_p7), [#allocation5], 4294964224  ;;  %358 = vmatprep.mubr.f32.mxu0 %v855_v0  ;;  %629 = vmatprep.subr.bf16.mxu1 %v856_v1  ;;  %v621_v5 = vpack.c.bf16 %v273_v3, %v271_v2  ;;  %v272_v6 = vld [vmem:[#allocation4 + $0x10] sm:$0xff]  ;;  %v275_v7 = vld [vmem:[#allocation4 + $0x28] sm:$0xff]  ;;  %vm857_vm1 = vmmov 0   ;;  %p265_p6 = scmp.lt.s32.totalorder %s907_s22, 1 }
  0x68   : > { %v277_v8 = vld [vmem:[#allocation4 + $0x38] sm:$0xff]  ;;  %v623_v9 = vpack.c.bf16 %v272_v6, %v270_v4  ;;  %v274_v11 = vld [vmem:[#allocation4 + $0x20] sm:$0xff]  ;;  %v276_v12 = vld [vmem:[#allocation4 + $0x30] sm:$0xff]  ;;  %618 = vmatprep.mubr.msk.f32.mxu1 %vm857_vm1, %v855_v0  ;;  %v281_v40 = vshrl.u32 %v280_v39, 7 }
  0x69   : > { %v625_v10 = vpack.c.bf16 %v277_v8, %v275_v7  ;;  %622 = vmatprep.subr.bf16.mxu0 %v621_v5  ;;  %v375_v13 = vld [vmem:[#allocation6] sm:$0xff]  ;;  %v376_v14 = vld [vmem:[#allocation6 + $0x8] sm:$0xff]  ;;  %v627_v15 = vpack.c.bf16 %v276_v12, %v274_v11  ;;  %v269_v17 = vld [vmem:[%s231_s29] sm:$0xff]  ;;  %s1093_s22 = smov (!%p265_p6, %s907_s22), 1 }
  0x6a   : > { %624 = vmatpush1.bf16.msra.mxu0 %v623_v9  ;;  %v630_v16 = vpack.c.bf16 %v376_v14, %v375_v13  ;;  %v377_v18 = vld [vmem:[#allocation6 + $0x10] sm:$0xff]  ;;  %v378_v19 = vld [vmem:[#allocation6 + $0x18] sm:$0xff]  ;;  %v379_v21 = vld [vmem:[#allocation6 + $0x20] sm:$0xff]  ;;  %v282_v41 = vsub.s32 0, %v281_v40  ;;  %v286_v52 = vsub.s32 1, %v281_v40  ;;  %s564_s28 = sshll.u32 %s1093_s22, 3 }
  0x6b   : > { %626 = vmatprep.subr.bf16.mxu0 %v625_v10  ;;  %v633_v20 = vpack.c.bf16 %v378_v19, %v377_v18  ;;  %v380_v22 = vld [vmem:[#allocation6 + $0x28] sm:$0xff]  ;;  %v381_v24 = vld [vmem:[#allocation6 + $0x30] sm:$0xff]  ;;  %v382_v25 = vld [vmem:[#allocation6 + $0x38] sm:$0xff]  ;;  %s268_s26 = scalar_lea.vmem %s1076_s5, %s564_s28 }
  0x6c   : > { %631 = vmatpush3.bf16.msra.mxu1 %v630_v16  ;;  %v636_v23 = vpack.c.bf16 %v380_v22, %v379_v21  ;;  %v639_v26 = vpack.c.bf16 %v382_v25, %v381_v24  ;;  %v383_v27 = vld [vmem:[#allocation6 + $0x40] sm:$0xff]  ;;  %v384_v28 = vld [vmem:[#allocation6 + $0x48] sm:$0xff]  ;;  %v385_v30 = vld [vmem:[#allocation6 + $0x50] sm:$0xff] }
  0x6d   : > { %632 = vmatprep.subr.bf16.mxu1 %v856_v1  ;;  %v642_v29 = vpack.c.bf16 %v384_v28, %v383_v27  ;;  %v386_v31 = vld [vmem:[#allocation6 + $0x58] sm:$0xff]  ;;  %v387_v33 = vld [vmem:[#allocation6 + $0x60] sm:$0xff]  ;;  %v388_v34 = vld [vmem:[#allocation6 + $0x68] sm:$0xff] }
  0x6e   : > { %628 = vmatpush1.bf16.msra.mxu0 %v627_v15  ;;  %v645_v32 = vpack.c.bf16 %v386_v31, %v385_v30  ;;  %v648_v35 = vpack.c.bf16 %v388_v34, %v387_v33  ;;  %v389_v36 = vld [vmem:[#allocation6 + $0x70] sm:$0xff]  ;;  %v390_v37 = vld [vmem:[#allocation6 + $0x78] sm:$0xff] }
  0x6f   : > { %v651_v38 = vpack.c.bf16 %v390_v37, %v389_v36  ;;  %v278_v42 = vld [vmem:[%s1073_s2] sm:$0x3] }
  0x70   : > { %634 = vmatpush3.bf16.msra.mxu1 %v633_v20  ;;  %v283_v43 = vrot.slane %v278_v42, %v282_v41  ;;  %v287_v53 = vrot.slane %v278_v42, %v286_v52  ;;  %v566_v60 = vld [vmem:[%s1075_s4] ss:$0 sm:$0xff] }
  0x71   : > { %565 = vmatmul.mubr.msk.f32.vlgmr.msra.gmra.mrb[0].mxu0 %vm290_vm0, %v269_v17  ;;  %635 = vmatprep.subr.bf16.mxu1 %v856_v1 }
  0x74   : > { %637 = vmatpush3.bf16.msra.mxu1 %v636_v23 }
  0x75   : > { %638 = vmatprep.subr.bf16.mxu1 %v856_v1 }
  0x78   : > { %640 = vmatpush3.bf16.msra.mxu1 %v639_v26 }
  0x79   : > { %641 = vmatprep.subr.bf16.mxu1 %v856_v1 }
  0x7c   : > { %643 = vmatpush3.bf16.msra.mxu1 %v642_v29 }
  0x7d   : > { %644 = vmatprep.subr.bf16.mxu1 %v856_v1 }
  0x80   : > { %646 = vmatpush3.bf16.msra.mxu1 %v645_v32 }
  0x81   : > { %647 = vmatprep.subr.bf16.mxu1 %v856_v1 }
  0x84   : > { %649 = vmatpush3.bf16.msra.mxu1 %v648_v35 }
  0x85   : > { %650 = vmatprep.subr.bf16.mxu1 %v856_v1 }
  0x88   : > { %652 = vmatpush3.bf16.msra.mxu1 %v651_v38 }
 0x144   : > { %v360_v44 = vpop.f32.mrb[0].mxu0 }
 0x145   : > { %v361_v45 = vadd.f32 %v360_v44, %v283_v43  ;;  %v362_v46 = vpop.f32.mrb[1].mxu0 }
 0x146   : > { %v363_v57 = vadd.f32 %v362_v46, %v287_v53 }
 0x147   : > { %v366_v47 = vmul.f32 %v361_v45, %v361_v45  ;;  %v365_v55 = vmul.f32 0.5, %v361_v45 }
 0x149   : > { %v367_v48 = vmul.f32 %v366_v47, %v361_v45 }
 0x14b   : > { %v368_v49 = vmul.f32 0.044715, %v367_v48 }
 0x14d   : > { %v369_v50 = vadd.f32 %v368_v49, %v361_v45 }
 0x14f   : > { %v370_v51 = vmul.f32 0.7978846, %v369_v50 }
 0x151   : > { %720 = vtanh.f32 %v370_v51 }
 0x15b   : > { %v721_v54 = vpop.eup %720 }
 0x15c   : > { %v372_v56 = vadd.f32 1.0, %v721_v54 }
 0x15e   : > { %v373_v58 = vmul.f32 %v372_v56, %v365_v55 }
 0x160   : > { %v374_v59 = vmul.f32 %v373_v58, %v363_v57 }
 0x162   : > { %619 = vmatmul.mubr.f32.vlgmr.msra.gmra.mrb[0].mxu1 %v374_v59 }
 0x235   : > { %v464_v61 = vpop.f32.mrb[0].mxu1 }
 0x236   : > { %v465_v62 = vadd.f32 %v566_v60, %v464_v61  ;;  %v620_v63 = vpop.f32.mrb[1].mxu1 }
 0x238   : > { %468 = vst [vmem:[%s268_s26] sm:$0xff] %v465_v62 }
 0x239 PF: > { %p16_p9 = scmp.ge.s32.totalorder %s981_s12, 4   ;;  %s1088_s18 = smov %s838_s19 }
 0x23a   : > { %s1089_s19 = smov %s842_s20  ;;  %s1090_s20 = smov %s990_s15 }
 0x23b   : > { %s1091_s21 = smov %s981_s12  ;;  %18 = sbr.rel (!%p16_p9) target bundleno = 4 (0x4), region = 88 }
 0x242   :  { %488 = vsyncpa [#allocation3], 1 }
 0x243   :  { %490 = vsyncpa [#allocation3 + $0x1], 1 }
 0x244   :  { %491 = vsyncpa [#allocation5], 1 }

</bundles_post_ra>
